<compile_context>
chip_gen: v7x
topology: tpu7x:2x2x1
jax: 0.10.0
libtpu: 0.0.40
codegen_flags: <defaults>
</compile_context>

<pallas_src>
import jax
import jax.numpy as jnp
from jax.experimental import pallas as pl
from jax.experimental.pallas import tpu as pltpu

INPUT_SIZE = 10
HIDDEN_SIZE = 100          # logical hidden size (as in the PyTorch module)
HIDDEN_PAD = 128           # lane-aligned padded hidden size
OUTPUT_SIZE = 4            # fizbuz: ["number", "fiz", "buz", "fizbuz"]
DEFAULT_TILE_B = 8192      # ~7 MiB VMEM/step -> fits v5e's 16 MiB scoped default
_SPLIT_THRESHOLD = 2048    # above this, keep >= 2 grid steps (v7x megacore)


def _round_up(n, m):
    return ((n + m - 1) // m) * m


def _activation_dtype():
    """bf16 tanh/bias path on v6e/v7x (bf16 EUP/VPU); f32 on v5e and older."""
    try:
        kind = jax.devices()[0].device_kind.lower()
    except Exception:
        return jnp.float32
    if ("v6" in kind) or ("v7" in kind) or ("7x" in kind):
        return jnp.bfloat16
    return jnp.float32


def _choose_tile(batch, tile_b):
    """Batch rows per grid step.  Single full-array tile for small batches;
    multiple-of-8 tiles otherwise, capped so large batches get >= 2 grid steps
    (so the 'parallel' axis can shard across both v7x TensorCores)."""
    if batch <= tile_b:
        if batch <= _SPLIT_THRESHOLD:
            return batch                                   # one full-array tile
        return min(max(8, (tile_b // 8) * 8),
                   _round_up((batch + 1) // 2, 8))         # >= 2 steps
    return max(8, (tile_b // 8) * 8)


def _make_kernel(act_dtype):
    def kernel(x_ref, w1_ref, b1_ref, w2_ref, b2_ref, o_ref):
        # Hidden layer on the MXU: bf16 operands, f32 accumulation.
        x = x_ref[...].astype(jnp.bfloat16)                 # in-kernel cast (VPU)
        h = jnp.dot(x, w1_ref[...], preferred_element_type=jnp.float32)
        h = h + b1_ref[...]                                 # f32 bias add
        # Sigmoid's affine part is folded into the params; only tanh remains.
        a = jnp.tanh(h.astype(act_dtype))                   # EUP (bf16 on v6e/v7x)
        # Output layer: [tb, HIDDEN_PAD] @ [HIDDEN_PAD, OUTPUT_SIZE]
        out = jnp.dot(a.astype(jnp.bfloat16), w2_ref[...],
                      preferred_element_type=jnp.float32)
        o_ref[...] = (out + b2_ref[...]).astype(o_ref.dtype)
    return kernel


def fizbuz_net(x, w1, b1, w2, b2, *, tile_b=DEFAULT_TILE_B):
    """Forward pass.  x: [B, INPUT_SIZE] f32.  Params must come from
    prepare_params(): w1 [IN, HIDDEN_PAD] bf16, b1 [1, HIDDEN_PAD] f32,
    w2 [HIDDEN_PAD, OUT] bf16, b2 [1, OUT] f32 (sigmoid affine already folded).
    Returns [B, OUTPUT_SIZE] f32."""
    batch, in_size = x.shape
    hidden_pad = w1.shape[1]
    out_size = w2.shape[1]

    tb = _choose_tile(batch, tile_b)
    grid = pl.cdiv(batch, tb)
    act_dtype = _activation_dtype()

    # Per-step VMEM footprint estimate (conservative, f32 activations).
    per_row = (2 * in_size * 4      # double-buffered x tile (f32)
               + 2 * out_size * 4   # double-buffered out tile (f32)
               + hidden_pad * 4     # h (f32)
               + hidden_pad * 2)    # tanh(h) / bf16 matmul operand
    weight_bytes = 2 * (w1.size * 2 + w2.size * 2 + b1.size * 4 + b2.size * 4)
    est_vmem = tb * per_row + weight_bytes

    compiler_kwargs = dict(dimension_semantics=("parallel",))
    if est_vmem > 12 * 1024 * 1024:      # exceeds the 16 MiB v5e scoped default
        compiler_kwargs["vmem_limit_bytes"] = min(int(est_vmem * 3 // 2),
                                                  100 * 1024 * 1024)

    flops = 2 * batch * (in_size * hidden_pad + hidden_pad * out_size)
    bytes_accessed = (batch * in_size * 4 + batch * out_size * 4
                      + w1.size * 2 + b1.size * 4 + w2.size * 2 + b2.size * 4)

    return pl.pallas_call(
        _make_kernel(act_dtype),
        out_shape=jax.ShapeDtypeStruct((batch, out_size), jnp.float32),
        grid=(grid,),
        in_specs=[
            # x: one batch tile per grid step (f32; cast to bf16 in-kernel)
            pl.BlockSpec((tb, in_size), lambda i: (i, 0)),
            # weights / biases: constant block -> resident in VMEM across the grid
            pl.BlockSpec((in_size, hidden_pad), lambda i: (0, 0)),
            pl.BlockSpec((1, hidden_pad), lambda i: (0, 0)),
            pl.BlockSpec((hidden_pad, out_size), lambda i: (0, 0)),
            pl.BlockSpec((1, out_size), lambda i: (0, 0)),
        ],
        out_specs=pl.BlockSpec((tb, out_size), lambda i: (i, 0)),
        compiler_params=pltpu.CompilerParams(**compiler_kwargs),
        cost_estimate=pl.CostEstimate(
            flops=flops,
            transcendentals=batch * hidden_pad,
            bytes_accessed=bytes_accessed),
    )(x, w1, b1, w2, b2)
    # TODO(synk): optional lane-dense output relayout ([B,4] -> [B//32,128] slab)
    # skipped pending a bundle-dump check that masked stores are on the critical path.


def prepare_params(w1, b1, w2, b2):
    """One-time param transform (outside the hot path):
      * fold sigmoid's affine part into the weights:
          sigmoid(h) @ W2 + b2 == tanh(h/2) @ (W2/2) + (b2 + 0.5*colsum(W2)),
        realised as  W1<-0.5*W1, b1<-0.5*b1, W2<-0.5*W2, b2<-b2+0.5*sum(W2,0);
      * zero-pad hidden 100 -> 128 lanes (padded activations are tanh(0)=0 and hit
        zero W2 rows, so results are exactly those of the unpadded network);
      * cast matmul operands to bf16 (biases stay f32).
    Expects [in, out]-layout params (transposed vs. PyTorch's nn.Linear)."""
    hidden = w1.shape[1]
    pad = _round_up(hidden, 128) - hidden
    b2f = b2 + 0.5 * jnp.sum(w2, axis=0, keepdims=True)
    w1f = jnp.pad(0.5 * w1, ((0, 0), (0, pad)))
    b1f = jnp.pad(0.5 * b1, ((0, 0), (0, pad)))
    w2f = jnp.pad(0.5 * w2, ((0, pad), (0, 0)))
    return (w1f.astype(jnp.bfloat16), b1f.astype(jnp.float32),
            w2f.astype(jnp.bfloat16), b2f.astype(jnp.float32))


def init_params(key):
    """nn.Linear default init U(-1/sqrt(fan_in), +1/sqrt(fan_in)), [in, out] layout."""
    k1, k2, k3, k4 = jax.random.split(key, 4)
    bound1 = 1.0 / jnp.sqrt(jnp.float32(INPUT_SIZE))
    bound2 = 1.0 / jnp.sqrt(jnp.float32(HIDDEN_SIZE))
    w1 = jax.random.uniform(k1, (INPUT_SIZE, HIDDEN_SIZE), jnp.float32, -bound1, bound1)
    b1 = jax.random.uniform(k2, (1, HIDDEN_SIZE), jnp.float32, -bound1, bound1)
    w2 = jax.random.uniform(k3, (HIDDEN_SIZE, OUTPUT_SIZE), jnp.float32, -bound2, bound2)
    b2 = jax.random.uniform(k4, (1, OUTPUT_SIZE), jnp.float32, -bound2, bound2)
    return w1, b1, w2, b2


if __name__ == "__main__":
    key = jax.random.PRNGKey(0)
    kx, kp, kx2 = jax.random.split(key, 3)

    # Raw (unpadded, unfolded) params for the f32 reference; folded/padded/bf16
    # params for the kernel.
    w1, b1, w2, b2 = init_params(kp)
    params = prepare_params(w1, b1, w2, b2)

    def reference(xv):
        return jax.nn.sigmoid(xv @ w1 + b1) @ w2 + b2

    # 1) Small batch: single full-array tile.  fizbuz inputs are binary encodings
    #    of integers, so use {0,1} floats (exact in bf16).
    batch = 8
    x = jax.random.bernoulli(kx, 0.5, (batch, INPUT_SIZE)).astype(jnp.float32)
    out = jax.block_until_ready(fizbuz_net(x, *params))
    ref = reference(x)
    assert out.shape == (batch, OUTPUT_SIZE)
    assert jnp.allclose(out, ref, atol=2e-2, rtol=2e-2), (
        f"max abs err {jnp.max(jnp.abs(out - ref))}")

    # 2) Multi-step grid with a partial last tile (exercises boundary masking and
    #    the pipelined batch loop at small scale).
    batch2 = 300
    x2 = jax.random.bernoulli(kx2, 0.5, (batch2, INPUT_SIZE)).astype(jnp.float32)
    out2 = jax.block_until_ready(fizbuz_net(x2, *params, tile_b=128))
    ref2 = reference(x2)
    assert out2.shape == (batch2, OUTPUT_SIZE)
    assert jnp.allclose(out2, ref2, atol=2e-2, rtol=2e-2), (
        f"max abs err {jnp.max(jnp.abs(out2 - ref2))}")

    print("KERNEL_OK")
</pallas_src>

<mosaic_0001>
module attributes {stable_mosaic.version = 11 : i64} {
  func.func @kernel(%arg0: i32, %arg1: memref<8x10xf32, #tpu.memory_space<vmem>>, %arg2: memref<10x128xbf16, #tpu.memory_space<vmem>>, %arg3: memref<1x128xf32, #tpu.memory_space<vmem>>, %arg4: memref<128x4xbf16, #tpu.memory_space<vmem>>, %arg5: memref<1x4xf32, #tpu.memory_space<vmem>>, %arg6: memref<8x4xf32, #tpu.memory_space<vmem>>) attributes {dimension_semantics = [#tpu.dimension_semantics<parallel>], iteration_bounds = array<i64: 1>, scalar_prefetch = 0 : i64, scratch_operands = 0 : i64, tpu.core_type = #tpu.core_type<tc>, window_params = [{transform_indices = @transform_0, window_bounds = array<i64: 8, 10>}, {pipeline_mode = #tpu.pipeline_mode<synchronous>, transform_indices = @transform_1, window_bounds = array<i64: 10, 128>}, {pipeline_mode = #tpu.pipeline_mode<synchronous>, transform_indices = @transform_2, window_bounds = array<i64: 1, 128>}, {pipeline_mode = #tpu.pipeline_mode<synchronous>, transform_indices = @transform_3, window_bounds = array<i64: 128, 4>}, {pipeline_mode = #tpu.pipeline_mode<synchronous>, transform_indices = @transform_4, window_bounds = array<i64: 1, 4>}, {transform_indices = @transform_5, window_bounds = array<i64: 8, 4>}]} {
    %c0 = arith.constant 0 : index
    %c0_0 = arith.constant 0 : index
    %0 = vector.load %arg1[%c0, %c0_0] : memref<8x10xf32, #tpu.memory_space<vmem>>, vector<8x10xf32>
    %1 = arith.truncf %0 : vector<8x10xf32> to vector<8x10xbf16>
    %c0_1 = arith.constant 0 : index
    %c0_2 = arith.constant 0 : index
    %2 = vector.load %arg2[%c0_1, %c0_2] : memref<10x128xbf16, #tpu.memory_space<vmem>>, vector<10x128xbf16>
    %cst = arith.constant dense<0.000000e+00> : vector<8x128xf32>
    %3 = tpu.matmul %1, %2, %cst {dimension_numbers = #tpu.dot_dimension_numbers<[1], [0], [0], [1], [0, 0, 1, 1], [], []>} : vector<8x10xbf16>, vector<10x128xbf16>, vector<8x128xf32> -> vector<8x128xf32>
    %c0_3 = arith.constant 0 : index
    %c0_4 = arith.constant 0 : index
    %4 = vector.load %arg3[%c0_3, %c0_4] : memref<1x128xf32, #tpu.memory_space<vmem>>, vector<1x128xf32>
    %5 = vector.broadcast %4 : vector<1x128xf32> to vector<8x128xf32>
    %6 = arith.addf %3, %5 : vector<8x128xf32>
    %7 = math.tanh %6 : vector<8x128xf32>
    %8 = arith.truncf %7 : vector<8x128xf32> to vector<8x128xbf16>
    %c0_5 = arith.constant 0 : index
    %c0_6 = arith.constant 0 : index
    %9 = vector.load %arg4[%c0_5, %c0_6] : memref<128x4xbf16, #tpu.memory_space<vmem>>, vector<128x4xbf16>
    %cst_7 = arith.constant dense<0.000000e+00> : vector<8x4xf32>
    %10 = tpu.matmul %8, %9, %cst_7 {dimension_numbers = #tpu.dot_dimension_numbers<[1], [0], [0], [1], [0, 0, 1, 1], [], []>} : vector<8x128xbf16>, vector<128x4xbf16>, vector<8x4xf32> -> vector<8x4xf32>
    %c0_8 = arith.constant 0 : index
    %c0_9 = arith.constant 0 : index
    %11 = vector.load %arg5[%c0_8, %c0_9] : memref<1x4xf32, #tpu.memory_space<vmem>>, vector<1x4xf32>
    %12 = vector.broadcast %11 : vector<1x4xf32> to vector<8x4xf32>
    %13 = arith.addf %10, %12 : vector<8x4xf32>
    %c0_10 = arith.constant 0 : index
    %c0_11 = arith.constant 0 : index
    %14 = vector.load %arg6[%c0_10, %c0_11] : memref<8x4xf32, #tpu.memory_space<vmem>>, vector<8x4xf32>
    tpu.vector_store %arg6[%c0_10, %c0_11], %13 {strides = array<i32>} : memref<8x4xf32, #tpu.memory_space<vmem>>, vector<8x4xf32>,
    return
  }
  func.func @transform_0(%arg0: i32) -> (i32, i32) {
    %c0_i32 = arith.constant 0 : i32
    %c0_i32_0 = arith.constant 0 : i32
    return %arg0, %c0_i32 : i32, i32
  }
  func.func @transform_1(%arg0: i32) -> (i32, i32) {
    %c0_i32 = arith.constant 0 : i32
    %c0_i32_0 = arith.constant 0 : i32
    %c0_i32_1 = arith.constant 0 : i32
    return %c0_i32, %c0_i32_0 : i32, i32
  }
  func.func @transform_2(%arg0: i32) -> (i32, i32) {
    %c0_i32 = arith.constant 0 : i32
    %c0_i32_0 = arith.constant 0 : i32
    %c0_i32_1 = arith.constant 0 : i32
    return %c0_i32, %c0_i32_0 : i32, i32
  }
  func.func @transform_3(%arg0: i32) -> (i32, i32) {
    %c0_i32 = arith.constant 0 : i32
    %c0_i32_0 = arith.constant 0 : i32
    %c0_i32_1 = arith.constant 0 : i32
    return %c0_i32, %c0_i32_0 : i32, i32
  }
  func.func @transform_4(%arg0: i32) -> (i32, i32) {
    %c0_i32 = arith.constant 0 : i32
    %c0_i32_0 = arith.constant 0 : i32
    %c0_i32_1 = arith.constant 0 : i32
    return %c0_i32, %c0_i32_0 : i32, i32
  }
  func.func @transform_5(%arg0: i32) -> (i32, i32) {
    %c0_i32 = arith.constant 0 : i32
    %c0_i32_0 = arith.constant 0 : i32
    return %arg0, %c0_i32 : i32, i32
  }
}

</mosaic_0001>

<bundles_post_ra>
// kernel: tpu_custom_call.1
= control target key start
LH: loop header
LB: loop body
LE: loop exit
PB: predicated region body
PF: predicated region fallthrough
CT: control target
= control target key end

     0   :  { %vm41_vm0 = vcmask 1044480   ;;  %v266_v0 = vmov 0.0   ;;  %vm267_vm1 = vmmov 0   ;;  %vm37_vm2 = vcmask 80896   ;;  %s337_s1 = inlined_call_operand.vmem [shape: bf16[10,128], index: 1, kind: input, shape index: {}]   ;;  %s338_s0 = inlined_call_operand.vmem [shape: f32[8,10], index: 0, kind: input, shape index: {}]   ;;  %s339_s3 = inlined_call_operand.vmem [shape: bf16[128,4], index: 3, kind: input, shape index: {}]   ;;  %s340_s2 = inlined_call_operand.vmem [shape: f32[1,128], index: 2, kind: input, shape index: {}]   ;;  %s341_s4 = inlined_call_operand.vmem [shape: f32[1,4], index: 4, kind: input, shape index: {}]   ;;  %s342_s5 = inlined_call_operand.vmem [shape: f32[8,4], index: 5, kind: output, shape index: {}]  }
   0x1   :  { %227 = vmatprep.subr.bf16.mxu0 %v266_v0  ;;  %v255_v1 = vld [vmem:[%s337_s1] sm:$0x1f]   ;;  %229 = vmatprep.mubr.msk.bf16.mxu0 %vm267_vm1, %v266_v0  ;;  %v257_v6 = vld [vmem:[%s339_s3 + $0x8] sm:$0xff]   ;;  %v258_v7 = vld [vmem:[%s339_s3 + $0x10] sm:$0xff]   ;;  %vm198_vm3 = vcmask 31744  }
   0x2   :  { %v21_v2 = vld [vmem:[%s338_s0] sm:$0xff]  ;;  %233 = vmatprep.subr.bf16.mxu1 %v266_v0  ;;  %249 = vmatprep.mubr.msk.bf16.mxu1 %vm267_vm1, %v266_v0  ;;  %v43_v3 = vsel %vm41_vm0, %v255_v1, 0  ;;  %v259_v8 = vld [vmem:[%s339_s3 + $0x18] sm:$0xff]   ;;  %v261_v10 = vld [vmem:[%s339_s3 + $0x28] sm:$0xff]  }
   0x3   :  { %v22_v4 = vpack.c.bf16 %v21_v2, %v21_v2  ;;  %v256_v5 = vld [vmem:[%s339_s3] sm:$0xff]   ;;  %228 = vmatpush3.bf16.msra.mxu0 %v43_v3  ;;  %v262_v11 = vld [vmem:[%s339_s3 + $0x30] sm:$0xff]   ;;  %v263_v12 = vld [vmem:[%s339_s3 + $0x38] sm:$0xff]  }
   0x4   :  { %234 = vmatpush3.bf16.msra.mxu1 %v256_v5  ;;  %v260_v9 = vld [vmem:[%s339_s3 + $0x20] sm:$0xff]  }
   0x5   :  { %235 = vmatprep.subr.bf16.mxu1 %v266_v0  ;;  %v204_v13 = vld [vmem:[%s340_s2] ss:$0 sm:$0xff] }
   0x6   :  { %230 = vmatmul.mubr.msk.bf16.vlgmr.msra.gmra.mrb[0].mxu0 %vm37_vm2, %v22_v4  ;;  %v207_v21 = vld [vmem:[%s341_s4] ss:$0 sm:$0xff] }
   0x8   :  { %236 = vmatpush3.bf16.msra.mxu1 %v257_v6 }
   0x9   :  { %237 = vmatprep.subr.bf16.mxu1 %v266_v0 }
   0xc   :  { %238 = vmatpush3.bf16.msra.mxu1 %v258_v7 }
   0xd   :  { %239 = vmatprep.subr.bf16.mxu1 %v266_v0 }
  0x10   :  { %240 = vmatpush3.bf16.msra.mxu1 %v259_v8 }
  0x11   :  { %241 = vmatprep.subr.bf16.mxu1 %v266_v0 }
  0x14   :  { %242 = vmatpush3.bf16.msra.mxu1 %v260_v9 }
  0x15   :  { %243 = vmatprep.subr.bf16.mxu1 %v266_v0 }
  0x18   :  { %244 = vmatpush3.bf16.msra.mxu1 %v261_v10 }
  0x19   :  { %245 = vmatprep.subr.bf16.mxu1 %v266_v0 }
  0x1c   :  { %246 = vmatpush3.bf16.msra.mxu1 %v262_v11 }
  0x1d   :  { %247 = vmatprep.subr.bf16.mxu1 %v266_v0 }
  0x20   :  { %248 = vmatpush3.bf16.msra.mxu1 %v263_v12 }
  0xd9   :  { %v79_v14 = vpop.f32.mrb[0].mxu0 }
  0xda   :  { %v80_v15 = vadd.f32 %v204_v13, %v79_v14  ;;  %v231_v16 = vpop.f32.mrb[1].mxu0 }
  0xdb   :  { %v82_v17 = vpop.f32.mrb[2].mxu0 }
  0xdc   :  { %264 = vtanh.f32 %v80_v15  ;;  %v232_v18 = vpop.f32.mrb[3].mxu0 }
  0xe6   :  { %v265_v19 = vpop.eup %264 }
  0xe7   :  { %v86_v20 = vpack.c.bf16 %v265_v19, %v265_v19 }
  0xe9   :  { %250 = vmatmul.mubr.bf16.vlgmr.msra.gmra.mrb[0].mxu1 %v86_v20 }
 0x1bc   :  { %v192_v22 = vpop.f32.mrb[0].mxu1 }
 0x1bd   :  { %v193_v23 = vadd.f32 %v207_v21, %v192_v22  ;;  %v251_v24 = vpop.f32.mrb[1].mxu1 }
 0x1be   :  { %v195_v25 = vpop.f32.mrb[2].mxu1 }
 0x1bf   :  { %199 = vst.msk [vmem:[%s342_s5] sm:$0xff] %vm198_vm3, %v193_v23  ;;  %v252_v26 = vpop.f32.mrb[3].mxu1 }

</bundles_post_ra>
